<compile_context>
chip_gen: v5e
topology: v5e:2x2
jax: 0.10.0
libtpu: 0.0.40
codegen_flags: <defaults>
</compile_context>

<pallas_src>
import jax
import jax.numpy as jnp
from jax import lax
from jax.experimental import pallas as pl
from jax.experimental.pallas import tpu as pltpu

_LANES = 128
_SUBLANES = 8                    # f32 sublane tile; accumulator granularity
_TARGET_BLOCK_BYTES = 2 << 20    # ~2 MiB per input block -> ~4 MiB moved per grid step


def _num_tensorcores() -> int:
    """TensorCores a single Pallas kernel can span on this chip."""
    try:
        kind = jax.devices()[0].device_kind.lower()
    except Exception:
        return 1
    if "v7" in kind:
        return 2
    # v4 / v5p megacore: two TensorCores per device share 'parallel' grid axes.
    if ("v4" in kind or "v5p" in kind) and "lite" not in kind:
        return 2
    return 1


def _is_v7() -> bool:
    try:
        return "v7" in jax.devices()[0].device_kind.lower()
    except Exception:
        return False


def _sublane_multiple(itemsize: int) -> int:
    # Sub-32-bit dtypes pack along sublanes: f32 -> 8, bf16 -> 16, int8/fp8 -> 32.
    return max(8, 8 * (4 // max(1, itemsize)))


def _huber_elementwise(a, b, delta):
    # Branch-free Huber (no compare/select):
    #   |d| <= delta -> 0.5*d^2 ;  |d| > delta -> delta*(|d| - 0.5*delta)
    d = a.astype(jnp.float32) - b.astype(jnp.float32)
    ad = jnp.abs(d)
    m = jnp.minimum(ad, delta)
    return m * (ad - 0.5 * m)


def _make_kernel(delta, tile_rows, ncores, valid_rows, need_mask):
    def kernel(a_ref, b_ref, out_ref):
        c = pl.program_id(0)   # core axis
        i = pl.program_id(1)   # reduction axis (last)

        @pl.when(i == 0)
        def _():
            out_ref[...] = jnp.zeros_like(out_ref)

        h = _huber_elementwise(a_ref[...], b_ref[...], delta)   # (tile_rows, 128) f32

        def accumulate(vals):
            # In-vreg accumulation: fold sublane-tiles with pure VPU adds; the single
            # cross-lane reduce happens once, on the (ncores*8,128) partials, in the
            # wrapper.
            out_ref[...] += jnp.sum(vals.reshape(-1, _SUBLANES, _LANES), axis=0)

        if need_mask:
            # Nominal start row of this block (un-clamped). Blocks that are duplicates
            # (index clamped in the index_map) have block_start >= valid_rows, so the
            # row mask zeroes them out entirely.
            block_start = (i * ncores + c) * tile_rows

            @pl.when(block_start + tile_rows <= valid_rows)
            def _():                       # fully valid block: no mask overhead
                accumulate(h)

            @pl.when(block_start + tile_rows > valid_rows)
            def _():                       # partial / duplicate block: mask rows
                row_ids = lax.broadcasted_iota(jnp.int32, (tile_rows, _LANES), 0)
                keep = (row_ids + block_start) < valid_rows
                accumulate(jnp.where(keep, h, 0.0))
        else:
            accumulate(h)

    return kernel


def huber_loss(inputs, targets, delta=1.0):
    """Mean Huber loss, matching nn.HuberLoss(reduction='mean', delta=delta)."""
    assert inputs.shape == targets.shape, "inputs/targets must have the same shape"
    delta = float(delta)

    dt = jnp.promote_types(inputs.dtype, targets.dtype)
    a = inputs.reshape(-1).astype(dt)
    b = targets.reshape(-1).astype(dt)
    n = a.shape[0]
    itemsize = jnp.dtype(dt).itemsize

    rows = n // _LANES                       # number of full 128-lane rows
    sub = _sublane_multiple(itemsize)

    total = jnp.float32(0.0)
    n_kernel = 0

    if rows >= sub:
        ncores = _num_tensorcores()

        # Largest sublane-aligned tile height, capped so one block is ~2 MiB.
        rows_cap = max(sub, (_TARGET_BLOCK_BYTES // (_LANES * itemsize)) // sub * sub)
        tile_rows = min(rows_cap, rows // sub * sub)

        num_blocks = pl.cdiv(rows, tile_rows)
        steps = pl.cdiv(num_blocks, ncores)
        # Masking needed iff the grid over-covers the rows (partial or duplicate block).
        need_mask = (ncores * steps * tile_rows) != rows

        n_kernel = rows * _LANES
        a2d = a[:n_kernel].reshape(rows, _LANES)
        b2d = b[:n_kernel].reshape(rows, _LANES)

        # Interleaved block ownership (core c takes blocks c, c+ncores, ...) for load
        # balance. Clamp so the DMA start never goes out of bounds; over-run blocks are
        # zeroed by the in-kernel row mask.
        def in_map(c, i):
            return (jnp.minimum(i * ncores + c, num_blocks - 1), 0)

        block_bytes = tile_rows * _LANES * itemsize
        # 2 inputs x 2 buffers (4x) + elementwise f32 temps (~4x) + slack, >= 16 MiB.
        vmem_limit = int(max(10 * block_bytes + (4 << 20), 16 << 20))

        def _run(core_sem):
            return pl.pallas_call(
                _make_kernel(delta, tile_rows, ncores, rows, need_mask),
                out_shape=jax.ShapeDtypeStruct((ncores * _SUBLANES, _LANES), jnp.float32),
                grid_spec=pltpu.PrefetchScalarGridSpec(
                    num_scalar_prefetch=0,
                    grid=(ncores, steps),             # reduction axis last
                    in_specs=[
                        pl.BlockSpec((tile_rows, _LANES), in_map),
                        pl.BlockSpec((tile_rows, _LANES), in_map),
                    ],
                    out_specs=pl.BlockSpec((_SUBLANES, _LANES), lambda c, i: (c, 0)),
                ),
                compiler_params=pltpu.CompilerParams(
                    dimension_semantics=(core_sem, pltpu.ARBITRARY),
                    vmem_limit_bytes=vmem_limit,
                ),
            )(a2d, b2d)

        if ncores == 2 and _is_v7():
            # Review: plain PARALLEL may not split the grid across v7x's two TCs;
            # CORE_PARALLEL does. Keep a safe fallback if this chip rejects it.
            try:
                partials = _run(pltpu.CORE_PARALLEL)
            except Exception:
                partials = _run(pltpu.PARALLEL)
        else:
            partials = _run(pltpu.PARALLEL)

        total = total + jnp.sum(partials)

    # Only the sub-128-element tail (or tiny inputs) falls back to plain jnp.
    if n_kernel < n:
        total = total + jnp.sum(_huber_elementwise(a[n_kernel:], b[n_kernel:], delta))

    return total / jnp.float32(n)


if __name__ == "__main__":
    key = jax.random.PRNGKey(0)
    k1, k2, k3, k4, k5, k6 = jax.random.split(key, 6)
    delta = 0.75  # stands in for cfg.delta

    def ref_huber(xx, yy, d):
        diff = xx.astype(jnp.float32) - yy.astype(jnp.float32)
        ad = jnp.abs(diff)
        return jnp.mean(jnp.where(ad <= d, 0.5 * diff * diff, d * (ad - 0.5 * d)))

    # Tile-aligned f32 (batch=2, channels=4, spatial=16): pure kernel path.
    x = jax.random.normal(k1, (2, 4, 16, 16), dtype=jnp.float32)
    y = jax.random.normal(k2, (2, 4, 16, 16), dtype=jnp.float32)
    loss = huber_loss(x, y, delta)
    jax.block_until_ready(loss)
    assert jnp.allclose(loss, ref_huber(x, y, delta), atol=1e-5, rtol=1e-5), (
        loss, ref_huber(x, y, delta))

    # Oddly shaped f32: exercises in-kernel row masking + <128-element jnp tail.
    x2 = jax.random.normal(k3, (3, 5, 17, 13), dtype=jnp.float32)
    y2 = jax.random.normal(k4, (3, 5, 17, 13), dtype=jnp.float32)
    loss2 = huber_loss(x2, y2, delta)
    jax.block_until_ready(loss2)
    assert jnp.allclose(loss2, ref_huber(x2, y2, delta), atol=1e-5, rtol=1e-5), (
        loss2, ref_huber(x2, y2, delta))

    # bf16 inputs: exercises the packed-sublane (16,128) tiling; math is f32 in-kernel.
    x3 = jax.random.normal(k5, (2, 8, 16, 16), dtype=jnp.bfloat16)
    y3 = jax.random.normal(k6, (2, 8, 16, 16), dtype=jnp.bfloat16)
    loss3 = huber_loss(x3, y3, delta)
    jax.block_until_ready(loss3)
    assert jnp.allclose(loss3, ref_huber(x3, y3, delta), atol=1e-5, rtol=1e-5), (
        loss3, ref_huber(x3, y3, delta))

    print("KERNEL_OK")
</pallas_src>

<mosaic_0001>
module attributes {stable_mosaic.version = 11 : i64} {
  func.func @kernel(%arg0: i32, %arg1: i32, %arg2: memref<16x128xf32, #tpu.memory_space<vmem>>, %arg3: memref<16x128xf32, #tpu.memory_space<vmem>>, %arg4: memref<8x128xf32, #tpu.memory_space<vmem>>) attributes {dimension_semantics = [#tpu.dimension_semantics<parallel>, #tpu.dimension_semantics<arbitrary>], iteration_bounds = array<i64: 1, 1>, scalar_prefetch = 0 : i64, scratch_operands = 0 : i64, tpu.core_type = #tpu.core_type<tc>, window_params = [{transform_indices = @transform_0, window_bounds = array<i64: 16, 128>}, {transform_indices = @transform_1, window_bounds = array<i64: 16, 128>}, {transform_indices = @transform_2, window_bounds = array<i64: 8, 128>}]} {
    %c0_i32 = arith.constant 0 : i32
    %0 = arith.cmpi eq, %arg1, %c0_i32 : i32
    %1 = arith.extui %0 : i1 to i32
    %c0_i32_0 = arith.constant 0 : i32
    %2 = arith.cmpi ne, %1, %c0_i32_0 : i32
    scf.if %2 {
      %cst_10 = arith.constant 0.000000e+00 : f32
      %18 = vector.broadcast %cst_10 : f32 to vector<8x128xf32>
      %c0_11 = arith.constant 0 : index
      %c0_12 = arith.constant 0 : index
      %19 = vector.load %arg4[%c0_11, %c0_12] : memref<8x128xf32, #tpu.memory_space<vmem>>, vector<8x128xf32>
      tpu.vector_store %arg4[%c0_11, %c0_12], %18 {strides = array<i32>} : memref<8x128xf32, #tpu.memory_space<vmem>>, vector<8x128xf32>,
    } else {
    }
    %c0 = arith.constant 0 : index
    %c0_1 = arith.constant 0 : index
    %3 = vector.load %arg2[%c0, %c0_1] : memref<16x128xf32, #tpu.memory_space<vmem>>, vector<16x128xf32>
    %c0_2 = arith.constant 0 : index
    %c0_3 = arith.constant 0 : index
    %4 = vector.load %arg3[%c0_2, %c0_3] : memref<16x128xf32, #tpu.memory_space<vmem>>, vector<16x128xf32>
    %5 = arith.subf %3, %4 : vector<16x128xf32>
    %6 = math.absf %5 : vector<16x128xf32>
    %cst = arith.constant 7.500000e-01 : f32
    %7 = vector.broadcast %cst : f32 to vector<16x128xf32>
    %8 = arith.minimumf %6, %7 : vector<16x128xf32>
    %cst_4 = arith.constant 5.000000e-01 : f32
    %9 = vector.broadcast %cst_4 : f32 to vector<16x128xf32>
    %10 = arith.mulf %9, %8 : vector<16x128xf32>
    %11 = arith.subf %6, %10 : vector<16x128xf32>
    %12 = arith.mulf %8, %11 : vector<16x128xf32>
    %c0_5 = arith.constant 0 : index
    %c0_6 = arith.constant 0 : index
    %13 = vector.load %arg4[%c0_5, %c0_6] : memref<8x128xf32, #tpu.memory_space<vmem>>, vector<8x128xf32>
    %14 = vector.shape_cast %12 : vector<16x128xf32> to vector<2x8x128xf32>
    %cst_7 = arith.constant dense<0.000000e+00> : vector<8x128xf32>
    %15 = vector.multi_reduction <add>, %14, %cst_7 [0] : vector<2x8x128xf32> to vector<8x128xf32>
    %16 = arith.addf %13, %15 : vector<8x128xf32>
    %c0_8 = arith.constant 0 : index
    %c0_9 = arith.constant 0 : index
    %17 = vector.load %arg4[%c0_8, %c0_9] : memref<8x128xf32, #tpu.memory_space<vmem>>, vector<8x128xf32>
    tpu.vector_store %arg4[%c0_8, %c0_9], %16 {strides = array<i32>} : memref<8x128xf32, #tpu.memory_space<vmem>>, vector<8x128xf32>,
    return
  }
  func.func @transform_0(%arg0: i32, %arg1: i32) -> (i32, i32) {
    %c1_i32 = arith.constant 1 : i32
    %0 = arith.muli %arg1, %c1_i32 : i32
    %1 = arith.addi %0, %arg0 : i32
    %c0_i32 = arith.constant 0 : i32
    %2 = arith.minsi %1, %c0_i32 : i32
    %c0_i32_0 = arith.constant 0 : i32
    %c0_i32_1 = arith.constant 0 : i32
    return %2, %c0_i32_0 : i32, i32
  }
  func.func @transform_1(%arg0: i32, %arg1: i32) -> (i32, i32) {
    %c1_i32 = arith.constant 1 : i32
    %0 = arith.muli %arg1, %c1_i32 : i32
    %1 = arith.addi %0, %arg0 : i32
    %c0_i32 = arith.constant 0 : i32
    %2 = arith.minsi %1, %c0_i32 : i32
    %c0_i32_0 = arith.constant 0 : i32
    %c0_i32_1 = arith.constant 0 : i32
    return %2, %c0_i32_0 : i32, i32
  }
  func.func @transform_2(%arg0: i32, %arg1: i32) -> (i32, i32) {
    %c0_i32 = arith.constant 0 : i32
    %c0_i32_0 = arith.constant 0 : i32
    return %arg0, %c0_i32 : i32, i32
  }
}

</mosaic_0001>

<bundles_post_ra>
// kernel: tpu_custom_call.1
= control target key start
LH: loop header
LB: loop body
LE: loop exit
PB: predicated region body
PF: predicated region fallthrough
CT: control target
= control target key end

     0   :  { %7 = vsyncpa [#allocation3], 0  ;;  %s224_s0 = inlined_call_operand.hbm [shape: f32[16,128], index: 0, kind: input, shape index: {}]   ;;  %s225_s1 = inlined_call_operand.hbm [shape: f32[16,128], index: 1, kind: input, shape index: {}]   ;;  %s226_s2 = inlined_call_operand.hbm [shape: f32[8,128], index: 2, kind: output, shape index: {}]  }
   0x1   :  { %8 = vsyncpa [#allocation6], 0 }
   0x2   :  { %9 = vsyncpa [#allocation4], 0  ;;  %s20_s11 = sshll.u32 %s224_s0, 4  ;;  %s195_s12 = smov [#allocation2]   ;;  %s21_s11 = int_to_ptr.hbm [resolvable:$true] %s20_s11 }
   0x3   :  { %s22_s13 = sshll.u32 %s195_s12, 4  ;;  %s39_s16 = sshll.u32 %s225_s1, 4  ;;  %s23_s13 = int_to_ptr.vmem [resolvable:$true] %s22_s13  ;;  %s40_s16 = int_to_ptr.hbm [resolvable:$true] %s39_s16 }
   0x4   :  { %s196_s17 = smov 128   ;;  %s197_s18 = smov 8  }
   0x5   :  { %28 = dma.hbm_to_vmem [thread:$0]  %s21_s11, 256, %s23_s13, [#allocation3], %s196_s17, %s196_s17, %s197_s18  }
   0x6   :  { %s198_s19 = smov [#allocation5]  }
   0x7   :  { %s41_s20 = sshll.u32 %s198_s19, 4  ;;  %s42_s20 = int_to_ptr.vmem [resolvable:$true] %s41_s20 }
   0x8   :  { %47 = dma.hbm_to_vmem [thread:$0]  %s40_s16, 256, %s42_s20, [#allocation6], %s196_s17, %s196_s17, %s197_s18  }
   0x9   :  { %189 = dma.done.wait [#allocation3], 256  }
   0xa   :  { %190 = vsyncadd [#allocation3], 4294967040 }
   0xb   :  { %191 = dma.done.wait [#allocation6], 256  }
   0xc   :  { %192 = vsyncadd [#allocation6], 4294967040  ;;  %v69_v0 = vld [vmem:[#allocation2] sm:$0xff]  ;;  %v70_v1 = vld [vmem:[#allocation2 + $0x8] sm:$0xff]  ;;  %s199_s0 = smov [#allocation7]   ;;  %s96_s23 = sshll.u32 %s226_s2, 4  ;;  %s97_s23 = int_to_ptr.hbm [resolvable:$true] %s96_s23 }
   0xd   :  { %v71_v2 = vld [vmem:[#allocation5] sm:$0xff]  ;;  %v72_v3 = vld [vmem:[#allocation5 + $0x8] sm:$0xff]  ;;  %s94_s1 = sshll.u32 %s199_s0, 4  ;;  %s95_s1 = int_to_ptr.vmem [resolvable:$true] %s94_s1 }
   0xe   :  { %v73_v4 = vsub.f32 %v69_v0, %v71_v2  ;;  %v74_v5 = vsub.f32 %v70_v1, %v72_v3 }
  0x10   :  { %v75_v6 = vand.u32 2147483647, %v73_v4  ;;  %v76_v7 = vand.u32 2147483647, %v74_v5 }
  0x12   :  { %v77_v8 = vmin.f32 %v75_v6, 0.75  ;;  %v78_v9 = vmin.f32 %v76_v7, 0.75 }
  0x14   :  { %v79_v10 = vmul.f32 0.5, %v77_v8  ;;  %v80_v11 = vmul.f32 0.5, %v78_v9 }
  0x16   :  { %v81_v12 = vsub.f32 %v75_v6, %v79_v10  ;;  %v82_v13 = vsub.f32 %v76_v7, %v80_v11 }
  0x18   :  { %v83_v14 = vmul.f32 %v81_v12, %v77_v8  ;;  %v84_v15 = vmul.f32 %v82_v13, %v78_v9 }
  0x1a   :  { %v86_v16 = vadd.f32 %v84_v15, %v83_v14 }
  0x1c   :  { %88 = vst [vmem:[#allocation7] sm:$0xff] %v86_v16 }
  0x1d   :  { %99 = dma.vmem_to_hbm [thread:$0]  %s95_s1, 128, %s97_s23, [#allocation4]  }
  0x1e   :  { %193 = dma.done.wait [#allocation4], 128  }
  0x1f   :  { %194 = vsyncadd [#allocation4], 4294967168 }
  0x20   :  { %104 = vsyncpa [#allocation3], 1 }
  0x21   :  { %105 = vsyncpa [#allocation6], 1 }
  0x22   :  { %106 = vsyncpa [#allocation4], 1 }

</bundles_post_ra>
